<compile_context>
chip_gen: v5e
topology: v5e:2x2
jax: 0.10.0
libtpu: 0.0.40
codegen_flags: <defaults>
</compile_context>

<pallas_src>
import functools

import jax
import jax.numpy as jnp
from jax.experimental import pallas as pl
from jax.experimental.pallas import tpu as pltpu


def _round_up(x: int, m: int) -> int:
    return (x + m - 1) // m * m


def aggr_sum_kernel(x_ref, h_ref, o_ref, acc_ref):
    # x_ref:   (1, TK)  int32  node-id slice for this k block
    # h_ref:   (TK, TD) H tile (native dtype)
    # o_ref:   (TV, TD) output tile (same V/D block across all k steps)
    # acc_ref: (TV, TD) float32 accumulator scratch
    k = pl.program_id(2)

    @pl.when(k == 0)
    def _():
        acc_ref[...] = jnp.zeros_like(acc_ref)

    TV = o_ref.shape[0]
    TK = h_ref.shape[0]
    v_base = pl.program_id(0) * TV

    node_ids = x_ref[...]  # (1, TK) int32
    row_idx = jax.lax.broadcasted_iota(jnp.int32, (TV, TK), 0) + v_base
    # mask[v, n] = (X_node[n] == v); 0/1 is exact in any float dtype, so build it
    # in H's dtype to keep the MXU matmul single-pass when H is bf16.
    mask = (jnp.broadcast_to(node_ids, (TV, TK)) == row_idx).astype(h_ref.dtype)

    acc_ref[...] += jnp.dot(mask, h_ref[...], preferred_element_type=jnp.float32)

    @pl.when(k == pl.num_programs(2) - 1)
    def _():
        o_ref[...] = acc_ref[...].astype(o_ref.dtype)


@functools.partial(jax.jit, static_argnames=("node_num", "tv", "td", "tk"))
def aggr_sum(H, X_node, node_num, *, tv=128, td=256, tk=512):
    """Pallas equivalent of AggrSum(node_num).forward(H, X_node)."""
    N, D = H.shape
    V = node_num
    dtype = H.dtype

    # Clamp tiles to the (128-aligned) problem extents so tiny problems use a
    # single padded block; all tiles stay multiples of (8, 128).
    tv = min(tv, _round_up(V, 128))
    td = min(td, _round_up(D, 128))
    tk = min(tk, _round_up(N, 128))
    V_pad = _round_up(V, tv)
    D_pad = _round_up(D, td)
    N_pad = _round_up(N, tk)

    # Pad H with zero rows/cols and the ids with -1 (never matches any v >= 0),
    # so padded entries contribute nothing.
    H_pad = jnp.zeros((N_pad, D_pad), dtype=dtype).at[:N, :D].set(H)
    x_pad = (jnp.full((1, N_pad), -1, dtype=jnp.int32)
             .at[0, :N].set(X_node.astype(jnp.int32)))

    grid = (V_pad // tv, D_pad // td, N_pad // tk)

    bytes_accessed = (N_pad * D_pad * H_pad.dtype.itemsize   # H
                      + V_pad * D_pad * H_pad.dtype.itemsize  # out
                      + N_pad * 4)                            # ids
    cost = pl.CostEstimate(flops=2 * V_pad * N_pad * D_pad,
                           transcendentals=0,
                           bytes_accessed=bytes_accessed)

    out_pad = pl.pallas_call(
        aggr_sum_kernel,
        out_shape=jax.ShapeDtypeStruct((V_pad, D_pad), dtype),
        grid_spec=pltpu.PrefetchScalarGridSpec(
            num_scalar_prefetch=0,
            grid=grid,
            in_specs=[
                pl.BlockSpec((1, tk), lambda i, j, k: (0, k)),   # node ids
                pl.BlockSpec((tk, td), lambda i, j, k: (k, j)),  # H tile
            ],
            out_specs=pl.BlockSpec((tv, td), lambda i, j, k: (i, j)),
            scratch_shapes=[pltpu.VMEM((tv, td), jnp.float32)],
        ),
        compiler_params=pltpu.CompilerParams(
            dimension_semantics=("parallel", "parallel", "arbitrary"),
            # Per-step footprint is ~2 MiB at default tiles; 32 MiB is safe on
            # v5e/v6e/v7x and keeps double-buffering alive.
            vmem_limit_bytes=32 * 1024 * 1024,
        ),
        cost_estimate=cost,
    )(x_pad, H_pad)

    return out_pad[:V, :D]


def _reference(H, X_node, V):
    mask = (X_node[None, :].astype(jnp.int32)
            == jnp.arange(V, dtype=jnp.int32)[:, None]).astype(H.dtype)
    return mask @ H


if __name__ == "__main__":
    key = jax.random.PRNGKey(0)
    k_h, k_x, k_h2, k_x2 = jax.random.split(key, 4)

    # Small shapes consistent with the module's forward.
    V, N, D = 4, 8, 32
    H = jax.random.normal(k_h, (N, D), dtype=jnp.float32)
    X_node = jax.random.randint(k_x, (N,), 0, V, dtype=jnp.int32)

    out = aggr_sum(H, X_node, V)
    jax.block_until_ready(out)
    ref = _reference(H, X_node, V)
    assert out.shape == (V, D)
    assert jnp.allclose(out, ref, atol=1e-5, rtol=1e-5)

    # Second shape exercising multiple V tiles and padding.
    V2, N2, D2 = 200, 300, 160
    H2 = jax.random.normal(k_h2, (N2, D2), dtype=jnp.float32)
    X2 = jax.random.randint(k_x2, (N2,), 0, V2, dtype=jnp.int32)

    out2 = aggr_sum(H2, X2, V2)
    jax.block_until_ready(out2)
    ref2 = _reference(H2, X2, V2)
    assert out2.shape == (V2, D2)
    assert jnp.allclose(out2, ref2, atol=1e-4, rtol=1e-4)

    print("KERNEL_OK")
</pallas_src>

<mosaic_0001>
module attributes {stable_mosaic.version = 11 : i64} {
  func.func @aggr_sum_kernel(%arg0: i32, %arg1: i32, %arg2: i32, %arg3: memref<1x128xi32, #tpu.memory_space<vmem>>, %arg4: memref<128x128xf32, #tpu.memory_space<vmem>>, %arg5: memref<128x128xf32, #tpu.memory_space<vmem>>, %arg6: memref<128x128xf32, #tpu.memory_space<vmem>>) attributes {dimension_semantics = [#tpu.dimension_semantics<parallel>, #tpu.dimension_semantics<parallel>, #tpu.dimension_semantics<arbitrary>], iteration_bounds = array<i64: 1, 1, 1>, scalar_prefetch = 0 : i64, scratch_operands = 1 : i64, tpu.core_type = #tpu.core_type<tc>, window_params = [{transform_indices = @transform_0, window_bounds = array<i64: 1, 128>}, {transform_indices = @transform_1, window_bounds = array<i64: 128, 128>}, {transform_indices = @transform_2, window_bounds = array<i64: 128, 128>}]} {
    %c0_i32 = arith.constant 0 : i32
    %0 = arith.cmpi eq, %arg2, %c0_i32 : i32
    %1 = arith.extui %0 : i1 to i32
    %c0_i32_0 = arith.constant 0 : i32
    %2 = arith.cmpi ne, %1, %c0_i32_0 : i32
    scf.if %2 {
      %cst_10 = arith.constant 0.000000e+00 : f32
      %21 = vector.broadcast %cst_10 : f32 to vector<128x128xf32>
      %c0_11 = arith.constant 0 : index
      %c0_12 = arith.constant 0 : index
      %22 = vector.load %arg6[%c0_11, %c0_12] : memref<128x128xf32, #tpu.memory_space<vmem>>, vector<128x128xf32>
      tpu.vector_store %arg6[%c0_11, %c0_12], %21 {strides = array<i32>} : memref<128x128xf32, #tpu.memory_space<vmem>>, vector<128x128xf32>,
    } else {
    }
    %c128_i32 = arith.constant 128 : i32
    %3 = arith.muli %arg0, %c128_i32 : i32
    %c0 = arith.constant 0 : index
    %c0_1 = arith.constant 0 : index
    %4 = vector.load %arg3[%c0, %c0_1] : memref<1x128xi32, #tpu.memory_space<vmem>>, vector<1x128xi32>
    %5 = tpu.iota {dimensions = array<i32: 0>} : vector<128x128xi32>
    %6 = vector.broadcast %3 : i32 to vector<128x128xi32>
    %7 = arith.addi %5, %6 : vector<128x128xi32>
    %8 = vector.shape_cast %4 : vector<1x128xi32> to vector<1x128xi32>
    %9 = vector.broadcast %8 : vector<1x128xi32> to vector<128x128xi32>
    %10 = arith.cmpi eq, %9, %7 : vector<128x128xi32>
    %11 = arith.extui %10 : vector<128x128xi1> to vector<128x128xi32>
    %12 = arith.sitofp %11 : vector<128x128xi32> to vector<128x128xf32>
    %c0_2 = arith.constant 0 : index
    %c0_3 = arith.constant 0 : index
    %13 = vector.load %arg6[%c0_2, %c0_3] : memref<128x128xf32, #tpu.memory_space<vmem>>, vector<128x128xf32>
    %c0_4 = arith.constant 0 : index
    %c0_5 = arith.constant 0 : index
    %14 = vector.load %arg4[%c0_4, %c0_5] : memref<128x128xf32, #tpu.memory_space<vmem>>, vector<128x128xf32>
    %cst = arith.constant dense<0.000000e+00> : vector<128x128xf32>
    %15 = tpu.matmul %12, %14, %cst {dimension_numbers = #tpu.dot_dimension_numbers<[1], [0], [0], [1], [0, 0, 1, 1], [], []>} : vector<128x128xf32>, vector<128x128xf32>, vector<128x128xf32> -> vector<128x128xf32>
    %16 = arith.addf %13, %15 : vector<128x128xf32>
    %c0_6 = arith.constant 0 : index
    %c0_7 = arith.constant 0 : index
    %17 = vector.load %arg6[%c0_6, %c0_7] : memref<128x128xf32, #tpu.memory_space<vmem>>, vector<128x128xf32>
    tpu.vector_store %arg6[%c0_6, %c0_7], %16 {strides = array<i32>} : memref<128x128xf32, #tpu.memory_space<vmem>>, vector<128x128xf32>,
    %c0_i32_8 = arith.constant 0 : i32
    %18 = arith.cmpi eq, %arg2, %c0_i32_8 : i32
    %19 = arith.extui %18 : i1 to i32
    %c0_i32_9 = arith.constant 0 : i32
    %20 = arith.cmpi ne, %19, %c0_i32_9 : i32
    scf.if %20 {
      %c0_10 = arith.constant 0 : index
      %c0_11 = arith.constant 0 : index
      %21 = vector.load %arg6[%c0_10, %c0_11] : memref<128x128xf32, #tpu.memory_space<vmem>>, vector<128x128xf32>
      %c0_12 = arith.constant 0 : index
      %c0_13 = arith.constant 0 : index
      %22 = vector.load %arg5[%c0_12, %c0_13] : memref<128x128xf32, #tpu.memory_space<vmem>>, vector<128x128xf32>
      tpu.vector_store %arg5[%c0_12, %c0_13], %21 {strides = array<i32>} : memref<128x128xf32, #tpu.memory_space<vmem>>, vector<128x128xf32>,
    } else {
    }
    return
  }
  func.func @transform_0(%arg0: i32, %arg1: i32, %arg2: i32) -> (i32, i32) {
    %c0_i32 = arith.constant 0 : i32
    %c0_i32_0 = arith.constant 0 : i32
    return %c0_i32, %arg2 : i32, i32
  }
  func.func @transform_1(%arg0: i32, %arg1: i32, %arg2: i32) -> (i32, i32) {
    %c0_i32 = arith.constant 0 : i32
    return %arg2, %arg1 : i32, i32
  }
  func.func @transform_2(%arg0: i32, %arg1: i32, %arg2: i32) -> (i32, i32) {
    %c0_i32 = arith.constant 0 : i32
    return %arg0, %arg1 : i32, i32
  }
}

</mosaic_0001>

<bundles_post_ra>
// kernel: aggr_sum.1
= control target key start
LH: loop header
LB: loop body
LE: loop exit
PB: predicated region body
PF: predicated region fallthrough
CT: control target
= control target key end

     0   :  { %v33_v10 = vlaneseq  ;;  %v366_v22 = vmov 1.0   ;;  %s517_s1 = inlined_call_operand.vmem [shape: f32[128,128], index: 1, kind: input, shape index: {}]   ;;  %s518_s0 = inlined_call_operand.vmem [shape: s32[1,128], index: 0, kind: input, shape index: {}]   ;;  %s519_s2 = inlined_call_operand.vmem [shape: f32[128,128], index: 2, kind: output, shape index: {}]  }
   0x1   :  { %v147_v0 = vld [vmem:[%s517_s1 + $0x78] sm:$0xff]  ;;  %v146_v1 = vld [vmem:[%s517_s1 + $0x70] sm:$0xff]  ;;  %v145_v2 = vld [vmem:[%s517_s1 + $0x68] sm:$0xff] }
   0x2   :  { %317 = vmatpush.msra.mxu2 %v147_v0  ;;  %318 = vmatpush.msra.mxu3 %v147_v0  ;;  %v144_v3 = vld [vmem:[%s517_s1 + $0x60] sm:$0xff]  ;;  %v143_v4 = vld [vmem:[%s517_s1 + $0x58] sm:$0xff]  ;;  %v142_v5 = vld [vmem:[%s517_s1 + $0x50] sm:$0xff]  ;;  %v418_v13 = vshrl.u32 %v33_v10, 7 }
   0x3   :  { %148 = vmatpush.msra.mxu0 %v147_v0  ;;  %316 = vmatpush.msra.mxu1 %v147_v0  ;;  %v141_v6 = vld [vmem:[%s517_s1 + $0x48] sm:$0xff]  ;;  %v140_v7 = vld [vmem:[%s517_s1 + $0x40] sm:$0xff]  ;;  %v139_v8 = vld [vmem:[%s517_s1 + $0x38] sm:$0xff] }
   0x4   :  { %320 = vmatpush.msra.mxu2 %v146_v1  ;;  %321 = vmatpush.msra.mxu3 %v146_v1  ;;  %v138_v9 = vld [vmem:[%s517_s1 + $0x30] sm:$0xff]  ;;  %v137_v11 = vld [vmem:[%s517_s1 + $0x28] sm:$0xff]  ;;  %v136_v12 = vld [vmem:[%s517_s1 + $0x20] sm:$0xff]  ;;  %v42_v16 = vadd.s32 64, %v418_v13  ;;  %v46_v18 = vadd.s32 96, %v418_v13  ;;  %v38_v20 = vadd.s32 32, %v418_v13 }
   0x5   :  { %149 = vmatpush.msra.mxu0 %v146_v1  ;;  %319 = vmatpush.msra.mxu1 %v146_v1  ;;  %v135_v14 = vld [vmem:[%s517_s1 + $0x18] sm:$0xff]  ;;  %v134_v15 = vld [vmem:[%s517_s1 + $0x10] sm:$0xff]  ;;  %v430_v17 = vld [vmem:[%s518_s0] ss:$0 sm:$0xff]  ;;  %v43_v23 = vadd.s32 72, %v418_v13  ;;  %v47_v24 = vadd.s32 104, %v418_v13 }
   0x6   :  { %323 = vmatpush.msra.mxu2 %v145_v2  ;;  %324 = vmatpush.msra.mxu3 %v145_v2  ;;  %v133_v19 = vld [vmem:[%s517_s1 + $0x8] sm:$0xff]  ;;  %v132_v21 = vld [vmem:[%s517_s1] sm:$0xff]  ;;  %vm76_vm0 = vcmp.eq.s32.totalorder %v430_v17, %v42_v16  ;;  %vm80_vm1 = vcmp.eq.s32.totalorder %v430_v17, %v46_v18  ;;  %vm68_vm2 = vcmp.eq.s32.totalorder %v430_v17, %v418_v13  ;;  %v35_v25 = vadd.s32 8, %v418_v13 }
   0x7   :  { %150 = vmatpush.msra.mxu0 %v145_v2  ;;  %322 = vmatpush.msra.mxu1 %v145_v2  ;;  %vm72_vm3 = vcmp.eq.s32.totalorder %v430_v17, %v38_v20  ;;  %v39_v26 = vadd.s32 40, %v418_v13  ;;  %vm77_vm4 = vcmp.eq.s32.totalorder %v430_v17, %v43_v23  ;;  %vm81_vm5 = vcmp.eq.s32.totalorder %v430_v17, %v47_v24 }
   0x8   :  { %326 = vmatpush.msra.mxu2 %v144_v3  ;;  %327 = vmatpush.msra.mxu3 %v144_v3  ;;  %vm69_vm6 = vcmp.eq.s32.totalorder %v430_v17, %v35_v25  ;;  %v44_v27 = vadd.s32 80, %v418_v13  ;;  %v48_v28 = vadd.s32 112, %v418_v13  ;;  %v36_v29 = vadd.s32 16, %v418_v13 }
   0x9   :  { %151 = vmatpush.msra.mxu0 %v144_v3  ;;  %325 = vmatpush.msra.mxu1 %v144_v3  ;;  %vm73_vm7 = vcmp.eq.s32.totalorder %v430_v17, %v39_v26  ;;  %v40_v30 = vadd.s32 48, %v418_v13  ;;  %v45_v31 = vadd.s32 88, %v418_v13  ;;  %v49_v32 = vadd.s32 120, %v418_v13 }
   0xa   :  { %329 = vmatpush.msra.mxu2 %v143_v4  ;;  %330 = vmatpush.msra.mxu3 %v143_v4  ;;  %vm78_vm8 = vcmp.eq.s32.totalorder %v430_v17, %v44_v27  ;;  %vm82_vm9 = vcmp.eq.s32.totalorder %v430_v17, %v48_v28  ;;  %vm70_vm10 = vcmp.eq.s32.totalorder %v430_v17, %v36_v29  ;;  %v37_v33 = vadd.s32 24, %v418_v13 }
   0xb   :  { %152 = vmatpush.msra.mxu0 %v143_v4  ;;  %328 = vmatpush.msra.mxu1 %v143_v4  ;;  %vm74_vm11 = vcmp.eq.s32.totalorder %v430_v17, %v40_v30  ;;  %v41_v34 = vadd.s32 56, %v418_v13  ;;  %vm79_vm12 = vcmp.eq.s32.totalorder %v430_v17, %v45_v31  ;;  %vm83_vm13 = vcmp.eq.s32.totalorder %v430_v17, %v49_v32 }
   0xc   :  { %332 = vmatpush.msra.mxu2 %v142_v5  ;;  %333 = vmatpush.msra.mxu3 %v142_v5  ;;  %vm71_vm14 = vcmp.eq.s32.totalorder %v430_v17, %v37_v33 }
   0xd   :  { %153 = vmatpush.msra.mxu0 %v142_v5  ;;  %331 = vmatpush.msra.mxu1 %v142_v5  ;;  %vm75_vm15 = vcmp.eq.s32.totalorder %v430_v17, %v41_v34 }
   0xe   :  { %335 = vmatpush.msra.mxu2 %v141_v6  ;;  %336 = vmatpush.msra.mxu3 %v141_v6 }
   0xf   :  { %154 = vmatpush.msra.mxu0 %v141_v6  ;;  %334 = vmatpush.msra.mxu1 %v141_v6 }
  0x10   :  { %338 = vmatpush.msra.mxu2 %v140_v7  ;;  %339 = vmatpush.msra.mxu3 %v140_v7 }
  0x11   :  { %155 = vmatpush.msra.mxu0 %v140_v7  ;;  %337 = vmatpush.msra.mxu1 %v140_v7 }
  0x12   :  { %341 = vmatpush.msra.mxu2 %v139_v8  ;;  %342 = vmatpush.msra.mxu3 %v139_v8 }
  0x13   :  { %156 = vmatpush.msra.mxu0 %v139_v8  ;;  %340 = vmatpush.msra.mxu1 %v139_v8 }
  0x14   :  { %344 = vmatpush.msra.mxu2 %v138_v9  ;;  %345 = vmatpush.msra.mxu3 %v138_v9 }
  0x15   :  { %157 = vmatpush.msra.mxu0 %v138_v9  ;;  %343 = vmatpush.msra.mxu1 %v138_v9 }
  0x16   :  { %347 = vmatpush.msra.mxu2 %v137_v11  ;;  %348 = vmatpush.msra.mxu3 %v137_v11 }
  0x17   :  { %158 = vmatpush.msra.mxu0 %v137_v11  ;;  %346 = vmatpush.msra.mxu1 %v137_v11 }
  0x18   :  { %350 = vmatpush.msra.mxu2 %v136_v12  ;;  %351 = vmatpush.msra.mxu3 %v136_v12 }
  0x19   :  { %159 = vmatpush.msra.mxu0 %v136_v12  ;;  %349 = vmatpush.msra.mxu1 %v136_v12 }
  0x1a   :  { %353 = vmatpush.msra.mxu2 %v135_v14  ;;  %354 = vmatpush.msra.mxu3 %v135_v14 }
  0x1b   :  { %160 = vmatpush.msra.mxu0 %v135_v14  ;;  %352 = vmatpush.msra.mxu1 %v135_v14 }
  0x1c   :  { %356 = vmatpush.msra.mxu2 %v134_v15  ;;  %357 = vmatpush.msra.mxu3 %v134_v15 }
  0x1d   :  { %161 = vmatpush.msra.mxu0 %v134_v15  ;;  %355 = vmatpush.msra.mxu1 %v134_v15 }
  0x1e   :  { %359 = vmatpush.msra.mxu2 %v133_v19  ;;  %360 = vmatpush.msra.mxu3 %v133_v19 }
  0x1f   :  { %162 = vmatpush.msra.mxu0 %v133_v19  ;;  %358 = vmatpush.msra.mxu1 %v133_v19 }
  0x20   :  { %362 = vmatpush.msra.mxu2 %v132_v21  ;;  %363 = vmatpush.msra.mxu3 %v132_v21 }
  0x21   :  { %308 = vmatmul.msk.f32.vlgmr.msra.gmra.mxu2 %vm76_vm0, %v366_v22  ;;  %312 = vmatmul.msk.f32.vlgmr.msra.gmra.mxu3 %vm80_vm1, %v366_v22 }
  0x22   :  { %163 = vmatpush.msra.mxu0 %v132_v21  ;;  %361 = vmatpush.msra.mxu1 %v132_v21 }
  0x23   :  { %300 = vmatmul.msk.f32.vlgmr.msra.gmra.mxu0 %vm68_vm2, %v366_v22  ;;  %304 = vmatmul.msk.f32.vlgmr.msra.gmra.mxu1 %vm72_vm3, %v366_v22 }
  0x29   :  { %309 = vmatmul.msk.f32.gmra.mxu2 %vm77_vm4, %v366_v22  ;;  %313 = vmatmul.msk.f32.gmra.mxu3 %vm81_vm5, %v366_v22 }
  0x2b   :  { %301 = vmatmul.msk.f32.gmra.mxu0 %vm69_vm6, %v366_v22  ;;  %305 = vmatmul.msk.f32.gmra.mxu1 %vm73_vm7, %v366_v22 }
  0x31   :  { %310 = vmatmul.msk.f32.gmra.mxu2 %vm78_vm8, %v366_v22  ;;  %314 = vmatmul.msk.f32.gmra.mxu3 %vm82_vm9, %v366_v22 }
  0x33   :  { %302 = vmatmul.msk.f32.gmra.mxu0 %vm70_vm10, %v366_v22  ;;  %306 = vmatmul.msk.f32.gmra.mxu1 %vm74_vm11, %v366_v22 }
  0x39   :  { %311 = vmatmul.msk.f32.gmra.mxu2 %vm79_vm12, %v366_v22  ;;  %315 = vmatmul.msk.f32.gmra.mxu3 %vm83_vm13, %v366_v22 }
  0x3b   :  { %303 = vmatmul.msk.f32.gmra.mxu0 %vm71_vm14, %v366_v22  ;;  %307 = vmatmul.msk.f32.gmra.mxu1 %vm75_vm15, %v366_v22 }
  0xa0   :  { %v165_v35 = vpop.f32.mrf.mxu0  ;;  %v177_v36 = vpop.f32.mrf.mxu1 }
  0xa1   :  { %264 = vst [vmem:[%s519_s2] sm:$0xff] %v165_v35 }
  0xa2   :  { %268 = vst [vmem:[%s519_s2 + $0x20] sm:$0xff] %v177_v36 }
  0xa4   :  { %v189_v37 = vpop.f32.mrf.mxu2  ;;  %v201_v38 = vpop.f32.mrf.mxu3 }
  0xa5   :  { %272 = vst [vmem:[%s519_s2 + $0x40] sm:$0xff] %v189_v37 }
  0xa6   :  { %276 = vst [vmem:[%s519_s2 + $0x60] sm:$0xff] %v201_v38 }
  0xa8   :  { %v168_v39 = vpop.f32.mrf.mxu0  ;;  %v180_v40 = vpop.f32.mrf.mxu1 }
  0xa9   :  { %265 = vst [vmem:[%s519_s2 + $0x8] sm:$0xff] %v168_v39 }
  0xaa   :  { %269 = vst [vmem:[%s519_s2 + $0x28] sm:$0xff] %v180_v40 }
  0xac   :  { %v192_v41 = vpop.f32.mrf.mxu2  ;;  %v204_v42 = vpop.f32.mrf.mxu3 }
  0xad   :  { %273 = vst [vmem:[%s519_s2 + $0x48] sm:$0xff] %v192_v41 }
  0xae   :  { %277 = vst [vmem:[%s519_s2 + $0x68] sm:$0xff] %v204_v42 }
  0xb0   :  { %v171_v43 = vpop.f32.mrf.mxu0  ;;  %v183_v44 = vpop.f32.mrf.mxu1 }
  0xb1   :  { %266 = vst [vmem:[%s519_s2 + $0x10] sm:$0xff] %v171_v43 }
  0xb2   :  { %270 = vst [vmem:[%s519_s2 + $0x30] sm:$0xff] %v183_v44 }
  0xb4   :  { %v195_v45 = vpop.f32.mrf.mxu2  ;;  %v207_v46 = vpop.f32.mrf.mxu3 }
  0xb5   :  { %274 = vst [vmem:[%s519_s2 + $0x50] sm:$0xff] %v195_v45 }
  0xb6   :  { %278 = vst [vmem:[%s519_s2 + $0x70] sm:$0xff] %v207_v46 }
  0xb8   :  { %v174_v47 = vpop.f32.mrf.mxu0  ;;  %v186_v48 = vpop.f32.mrf.mxu1 }
  0xb9   :  { %267 = vst [vmem:[%s519_s2 + $0x18] sm:$0xff] %v174_v47 }
  0xba   :  { %271 = vst [vmem:[%s519_s2 + $0x38] sm:$0xff] %v186_v48 }
  0xbc   :  { %v198_v49 = vpop.f32.mrf.mxu2  ;;  %v210_v50 = vpop.f32.mrf.mxu3 }
  0xbd   :  { %275 = vst [vmem:[%s519_s2 + $0x58] sm:$0xff] %v198_v49 }
  0xbe   :  { %279 = vst [vmem:[%s519_s2 + $0x78] sm:$0xff] %v210_v50 }

</bundles_post_ra>
